<compile_context>
chip_gen: v5e
topology: v5e:2x2
jax: 0.10.0
libtpu: 0.0.40
codegen_flags: <defaults>
</compile_context>

<pallas_src>
import jax
import jax.numpy as jnp
from jax.experimental import pallas as pl
from jax.experimental.pallas import tpu as pltpu

_LANE = 128


# ----------------------------------------------------------------------------
# Pallas kernel: fused pooling + 2 graph convolutions, whole batch in one shot
# ----------------------------------------------------------------------------
def _convblock3_kernel(Pb_ref, Ab_ref, x_ref, w1r_ref, w1n_ref, b1_ref,
                       w2r_ref, w2n_ref, b2_ref, o_ref):
    """Batch lives in the M/sublane dimension (block-diagonal P / A).

    Storage dtype of P/A/x/W is bfloat16; every dot accumulates in float32 on
    the MXU. Only the FINAL output is lane-padded to 128, so no zero
    propagation of padded lanes through A is relied upon."""
    f32 = jnp.float32
    bf16 = jnp.bfloat16

    Ab = Ab_ref[...]                                 # (M, M) block-diag adjacency

    # CustomPoolingAdd: out[dst] += w_e * x[src]  ==  dense (block-diag) P @ x
    # TODO(synk): production mesh sizes -> scalar-prefetched gather/segment-sum
    #   instead of the dense O(Nc*Nf) pooling matmul.
    xp = jnp.dot(Pb_ref[...], x_ref[...], preferred_element_type=f32).astype(bf16)

    # Layer 1:  h = x @ W_root + (A @ x) @ W_nb + b
    # Two accumulating natural-K dots (avoids a 256-wide stacked contraction
    # that would cost an extra MXU pass on v5e).
    agg1 = jnp.dot(Ab, xp, preferred_element_type=f32).astype(bf16)
    h1 = (jnp.dot(xp, w1r_ref[...], preferred_element_type=f32)
          + jnp.dot(agg1, w1n_ref[...], preferred_element_type=f32)
          + b1_ref[...]).astype(bf16)

    # Layer 2: same pattern; W2/b2 were pre-padded to 128 output lanes so the
    # store below is a full, unmasked 128-lane vst.
    agg2 = jnp.dot(Ab, h1, preferred_element_type=f32).astype(bf16)
    h2 = (jnp.dot(h1, w2r_ref[...], preferred_element_type=f32)
          + jnp.dot(agg2, w2n_ref[...], preferred_element_type=f32)
          + b2_ref[...])
    o_ref[...] = h2.astype(o_ref.dtype)


# ----------------------------------------------------------------------------
# One-time (parameter-build-time) preprocessing — hoisted out of the forward
# ----------------------------------------------------------------------------
def prepare_convblock3(P, A, params, batch):
    """Fold the shared mesh structure over the batch (Pb = kron(I_B, P),
    Ab = kron(I_B, A)), cast structure + weights to bfloat16, and pad ONLY the
    last layer's weights/bias to a 128-lane output width."""
    bf16 = jnp.bfloat16
    f32 = jnp.float32
    Nc, _ = P.shape
    _, Cout = params["w1_root"].shape
    co_p = ((Cout + _LANE - 1) // _LANE) * _LANE      # lane-dense output width

    eye = jnp.eye(batch, dtype=f32)

    def pad_cols(w, cols):
        return jnp.zeros((w.shape[0], cols), f32).at[:, : w.shape[1]].set(w)

    return dict(
        Pb=jnp.kron(eye, P.astype(f32)).astype(bf16),        # (B*Nc, B*Nf)
        Ab=jnp.kron(eye, A.astype(f32)).astype(bf16),        # (B*Nc, B*Nc)
        w1r=params["w1_root"].astype(bf16),                   # (Cin, Cout)
        w1n=params["w1_nb"].astype(bf16),
        b1=params["b1"].astype(f32),                          # (1, Cout)
        w2r=pad_cols(params["w2_root"], co_p).astype(bf16),   # (Cout, 128)
        w2n=pad_cols(params["w2_nb"], co_p).astype(bf16),
        b2=pad_cols(params["b2"], co_p).astype(f32),          # (1, 128)
        batch=batch, n_coarse=Nc, c_out=Cout, c_out_padded=co_p,
    )


# ----------------------------------------------------------------------------
# Forward wrapper
# ----------------------------------------------------------------------------
def conv_block3_fwd(prep, x):
    """Batched _ConvBlock3 forward. x: (B, Nf, Cin) fine-graph node features."""
    B, Nf, Cin = x.shape
    assert B == prep["batch"]
    Nc, Cout, co_p = prep["n_coarse"], prep["c_out"], prep["c_out_padded"]
    M = B * Nc

    # x enters at its natural channel width; batch flattened into M/sublanes.
    x_flat = x.reshape(B * Nf, Cin).astype(jnp.bfloat16)

    vmem = pl.BlockSpec(memory_space=pltpu.MemorySpace.VMEM)
    out = pl.pallas_call(
        _convblock3_kernel,
        out_shape=jax.ShapeDtypeStruct((M, co_p), jnp.float32),
        # Single fused step: no grid -> zero per-step pipeline overhead and
        # exactly one DMA per operand (everything fits comfortably in VMEM).
        # TODO(synk): production sizes -> grid over batch / A row panels with
        #   an f32 accumulator, pl.Buffered(1) on grid-invariant operands,
        #   explicit vmem_limit_bytes, 2-step "parallel" grid on v7x.
        in_specs=[vmem] * 9,
        out_specs=vmem,
    )(prep["Pb"], prep["Ab"], x_flat, prep["w1r"], prep["w1n"], prep["b1"],
      prep["w2r"], prep["w2n"], prep["b2"])

    return out.reshape(B, Nc, co_p)[:, :, :Cout]


# ----------------------------------------------------------------------------
# Glue: build dense pooling / adjacency matrices from edge lists (plain JAX)
# ----------------------------------------------------------------------------
def dense_from_edges(edge_index, edge_attr, n_dst, n_src):
    src, dst = edge_index[0], edge_index[1]
    M = jnp.zeros((n_dst, n_src), jnp.float32)
    return M.at[dst, src].add(edge_attr)


def pure_jax_reference(P, A, x, p):
    """Per-batch reference with the same bf16-storage / f32-accumulate policy
    as the kernel (so the check isolates kernel correctness from the
    precision choice)."""
    bf, f32 = jnp.bfloat16, jnp.float32
    Pb, Ab, xb = P.astype(bf), A.astype(bf), x.astype(bf)
    w1r, w1n = p["w1_root"].astype(bf), p["w1_nb"].astype(bf)
    w2r, w2n = p["w2_root"].astype(bf), p["w2_nb"].astype(bf)

    xp = jnp.einsum("cf,bfi->bci", Pb, xb, preferred_element_type=f32).astype(bf)
    agg1 = jnp.einsum("cd,bdi->bci", Ab, xp, preferred_element_type=f32).astype(bf)
    h1 = (jnp.einsum("bci,io->bco", xp, w1r, preferred_element_type=f32)
          + jnp.einsum("bci,io->bco", agg1, w1n, preferred_element_type=f32)
          + p["b1"]).astype(bf)
    agg2 = jnp.einsum("cd,bdo->bco", Ab, h1, preferred_element_type=f32).astype(bf)
    h2 = (jnp.einsum("bco,op->bcp", h1, w2r, preferred_element_type=f32)
          + jnp.einsum("bco,op->bcp", agg2, w2n, preferred_element_type=f32)
          + p["b2"])
    return h2


# ----------------------------------------------------------------------------
# Main
# ----------------------------------------------------------------------------
if __name__ == "__main__":
    key = jax.random.PRNGKey(0)
    B = 4                     # batched feature sets sharing one mesh structure
    Nf, Nc = 32, 16           # fine / coarse node counts
    Cin, Cout = 8, 16         # in_channels / out_channels

    ks = jax.random.split(key, 10)

    # fine-graph node features (batched)
    x = jax.random.normal(ks[0], (B, Nf, Cin), jnp.float32)

    # pooling graph: each fine node j -> coarse node j//2, weighted edges
    pool_src = jnp.arange(Nf, dtype=jnp.int32)
    pool_dst = pool_src // 2
    pool_edge_attr = jax.random.uniform(ks[1], (Nf,), jnp.float32) + 0.5
    P = dense_from_edges(jnp.stack([pool_src, pool_dst]), pool_edge_attr, Nc, Nf)

    # coarse point-point graph: ring connectivity (both directions), weighted
    i = jnp.arange(Nc, dtype=jnp.int32)
    pp_src = jnp.concatenate([i, i])
    pp_dst = jnp.concatenate([(i + 1) % Nc, (i - 1) % Nc])
    pp_edge_attr = jax.random.uniform(ks[2], (2 * Nc,), jnp.float32) + 0.5
    A = dense_from_edges(jnp.stack([pp_src, pp_dst]), pp_edge_attr, Nc, Nc)

    # deterministic parameter init (shapes from CustomGraphConvPointPoint)
    sc1 = 1.0 / jnp.sqrt(jnp.float32(Cin))
    sc2 = 1.0 / jnp.sqrt(jnp.float32(Cout))
    params = {
        "w1_root": sc1 * jax.random.normal(ks[3], (Cin, Cout), jnp.float32),
        "w1_nb":   sc1 * jax.random.normal(ks[4], (Cin, Cout), jnp.float32),
        "b1":      sc1 * jax.random.normal(ks[5], (1, Cout), jnp.float32),
        "w2_root": sc2 * jax.random.normal(ks[6], (Cout, Cout), jnp.float32),
        "w2_nb":   sc2 * jax.random.normal(ks[7], (Cout, Cout), jnp.float32),
        "b2":      sc2 * jax.random.normal(ks[8], (1, Cout), jnp.float32),
    }

    prep = prepare_convblock3(P, A, params, batch=B)     # one-time preprocessing
    fwd = jax.jit(lambda feats: conv_block3_fwd(prep, feats))

    out = jax.block_until_ready(fwd(x))

    ref = pure_jax_reference(P, A, x, params)
    assert out.shape == (B, Nc, Cout)
    # kernel and reference share the bf16 storage / f32 accumulation policy,
    # so deviations are only f32 accumulation-order noise (~1e-5)
    assert jnp.allclose(out, ref, atol=1e-2, rtol=1e-2), "mismatch vs JAX reference"

    print("KERNEL_OK")
</pallas_src>

<mosaic_0001>
module attributes {stable_mosaic.version = 11 : i64} {
  func.func @_convblock3_kernel(%arg0: memref<64x128xbf16, #tpu.memory_space<vmem>>, %arg1: memref<64x64xbf16, #tpu.memory_space<vmem>>, %arg2: memref<128x8xbf16, #tpu.memory_space<vmem>>, %arg3: memref<8x16xbf16, #tpu.memory_space<vmem>>, %arg4: memref<8x16xbf16, #tpu.memory_space<vmem>>, %arg5: memref<1x16xf32, #tpu.memory_space<vmem>>, %arg6: memref<16x128xbf16, #tpu.memory_space<vmem>>, %arg7: memref<16x128xbf16, #tpu.memory_space<vmem>>, %arg8: memref<1x128xf32, #tpu.memory_space<vmem>>, %arg9: memref<64x128xf32, #tpu.memory_space<vmem>>) attributes {dimension_semantics = [], scalar_prefetch = 0 : i64, scratch_operands = 0 : i64, tpu.core_type = #tpu.core_type<tc>} {
    %c0 = arith.constant 0 : index
    %c0_0 = arith.constant 0 : index
    %0 = vector.load %arg1[%c0, %c0_0] : memref<64x64xbf16, #tpu.memory_space<vmem>>, vector<64x64xbf16>
    %c0_1 = arith.constant 0 : index
    %c0_2 = arith.constant 0 : index
    %1 = vector.load %arg0[%c0_1, %c0_2] : memref<64x128xbf16, #tpu.memory_space<vmem>>, vector<64x128xbf16>
    %c0_3 = arith.constant 0 : index
    %c0_4 = arith.constant 0 : index
    %2 = vector.load %arg2[%c0_3, %c0_4] : memref<128x8xbf16, #tpu.memory_space<vmem>>, vector<128x8xbf16>
    %cst = arith.constant dense<0.000000e+00> : vector<64x8xf32>
    %3 = tpu.matmul %1, %2, %cst {dimension_numbers = #tpu.dot_dimension_numbers<[1], [0], [0], [1], [0, 0, 1, 1], [], []>} : vector<64x128xbf16>, vector<128x8xbf16>, vector<64x8xf32> -> vector<64x8xf32>
    %4 = arith.truncf %3 : vector<64x8xf32> to vector<64x8xbf16>
    %cst_5 = arith.constant dense<0.000000e+00> : vector<64x8xf32>
    %5 = tpu.matmul %0, %4, %cst_5 {dimension_numbers = #tpu.dot_dimension_numbers<[1], [0], [0], [1], [0, 0, 1, 1], [], []>} : vector<64x64xbf16>, vector<64x8xbf16>, vector<64x8xf32> -> vector<64x8xf32>
    %6 = arith.truncf %5 : vector<64x8xf32> to vector<64x8xbf16>
    %c0_6 = arith.constant 0 : index
    %c0_7 = arith.constant 0 : index
    %7 = vector.load %arg3[%c0_6, %c0_7] : memref<8x16xbf16, #tpu.memory_space<vmem>>, vector<8x16xbf16>
    %cst_8 = arith.constant dense<0.000000e+00> : vector<64x16xf32>
    %8 = tpu.matmul %4, %7, %cst_8 {dimension_numbers = #tpu.dot_dimension_numbers<[1], [0], [0], [1], [0, 0, 1, 1], [], []>} : vector<64x8xbf16>, vector<8x16xbf16>, vector<64x16xf32> -> vector<64x16xf32>
    %c0_9 = arith.constant 0 : index
    %c0_10 = arith.constant 0 : index
    %9 = vector.load %arg4[%c0_9, %c0_10] : memref<8x16xbf16, #tpu.memory_space<vmem>>, vector<8x16xbf16>
    %cst_11 = arith.constant dense<0.000000e+00> : vector<64x16xf32>
    %10 = tpu.matmul %6, %9, %cst_11 {dimension_numbers = #tpu.dot_dimension_numbers<[1], [0], [0], [1], [0, 0, 1, 1], [], []>} : vector<64x8xbf16>, vector<8x16xbf16>, vector<64x16xf32> -> vector<64x16xf32>
    %11 = arith.addf %8, %10 : vector<64x16xf32>
    %c0_12 = arith.constant 0 : index
    %c0_13 = arith.constant 0 : index
    %12 = vector.load %arg5[%c0_12, %c0_13] : memref<1x16xf32, #tpu.memory_space<vmem>>, vector<1x16xf32>
    %13 = vector.broadcast %12 : vector<1x16xf32> to vector<64x16xf32>
    %14 = arith.addf %11, %13 : vector<64x16xf32>
    %15 = arith.truncf %14 : vector<64x16xf32> to vector<64x16xbf16>
    %cst_14 = arith.constant dense<0.000000e+00> : vector<64x16xf32>
    %16 = tpu.matmul %0, %15, %cst_14 {dimension_numbers = #tpu.dot_dimension_numbers<[1], [0], [0], [1], [0, 0, 1, 1], [], []>} : vector<64x64xbf16>, vector<64x16xbf16>, vector<64x16xf32> -> vector<64x16xf32>
    %17 = arith.truncf %16 : vector<64x16xf32> to vector<64x16xbf16>
    %c0_15 = arith.constant 0 : index
    %c0_16 = arith.constant 0 : index
    %18 = vector.load %arg6[%c0_15, %c0_16] : memref<16x128xbf16, #tpu.memory_space<vmem>>, vector<16x128xbf16>
    %cst_17 = arith.constant dense<0.000000e+00> : vector<64x128xf32>
    %19 = tpu.matmul %15, %18, %cst_17 {dimension_numbers = #tpu.dot_dimension_numbers<[1], [0], [0], [1], [0, 0, 1, 1], [], []>} : vector<64x16xbf16>, vector<16x128xbf16>, vector<64x128xf32> -> vector<64x128xf32>
    %c0_18 = arith.constant 0 : index
    %c0_19 = arith.constant 0 : index
    %20 = vector.load %arg7[%c0_18, %c0_19] : memref<16x128xbf16, #tpu.memory_space<vmem>>, vector<16x128xbf16>
    %cst_20 = arith.constant dense<0.000000e+00> : vector<64x128xf32>
    %21 = tpu.matmul %17, %20, %cst_20 {dimension_numbers = #tpu.dot_dimension_numbers<[1], [0], [0], [1], [0, 0, 1, 1], [], []>} : vector<64x16xbf16>, vector<16x128xbf16>, vector<64x128xf32> -> vector<64x128xf32>
    %22 = arith.addf %19, %21 : vector<64x128xf32>
    %c0_21 = arith.constant 0 : index
    %c0_22 = arith.constant 0 : index
    %23 = vector.load %arg8[%c0_21, %c0_22] : memref<1x128xf32, #tpu.memory_space<vmem>>, vector<1x128xf32>
    %24 = vector.broadcast %23 : vector<1x128xf32> to vector<64x128xf32>
    %25 = arith.addf %22, %24 : vector<64x128xf32>
    %c0_23 = arith.constant 0 : index
    %c0_24 = arith.constant 0 : index
    %26 = vector.load %arg9[%c0_23, %c0_24] : memref<64x128xf32, #tpu.memory_space<vmem>>, vector<64x128xf32>
    tpu.vector_store %arg9[%c0_23, %c0_24], %25 {strides = array<i32>} : memref<64x128xf32, #tpu.memory_space<vmem>>, vector<64x128xf32>,
    return
  }
}

</mosaic_0001>

<bundles_post_ra>
// kernel: _lambda_.1
= control target key start
LH: loop header
LB: loop body
LE: loop exit
PB: predicated region body
PF: predicated region fallthrough
CT: control target
= control target key end

     0   :  { %s828_s0 = inlined_call_operand.vmem [shape: bf16[64,128], index: 0, kind: input, shape index: {}]   ;;  %s829_s1 = inlined_call_operand.vmem [shape: bf16[64,64], index: 1, kind: input, shape index: {}]   ;;  %s830_s2 = inlined_call_operand.vmem [shape: bf16[128,8], index: 2, kind: input, shape index: {}]   ;;  %s831_s3 = inlined_call_operand.vmem [shape: bf16[8,16], index: 3, kind: input, shape index: {}]   ;;  %s832_s4 = inlined_call_operand.vmem [shape: bf16[8,16], index: 4, kind: input, shape index: {}]   ;;  %s833_s5 = inlined_call_operand.vmem [shape: f32[1,16], index: 5, kind: input, shape index: {}]   ;;  %s834_s6 = inlined_call_operand.vmem [shape: bf16[16,128], index: 6, kind: input, shape index: {}]   ;;  %s835_s7 = inlined_call_operand.vmem [shape: bf16[16,128], index: 7, kind: input, shape index: {}]   ;;  %s836_s8 = inlined_call_operand.vmem [shape: f32[1,128], index: 8, kind: input, shape index: {}]   ;;  %s837_s9 = inlined_call_operand.hbm [shape: f32[64,128], index: 9, kind: output, shape index: {}]  }
   0x1   :  { %v626_v0 = vld [vmem:[%s830_s2 + $0x38] sm:$0xff]  ;;  %v625_v1 = vld [vmem:[%s830_s2 + $0x30] sm:$0xff] }
   0x2   :  { %138 = vmatpush.bf16.msra.mxu0 %v626_v0 }
   0x3   :  { %14 = vsyncpa [#allocation3], 0  ;;  %v624_v2 = vld [vmem:[%s830_s2 + $0x28] sm:$0xff]  ;;  %v623_v3 = vld [vmem:[%s830_s2 + $0x20] sm:$0xff]  ;;  %vm252_vm0 = vcmask 1043456   ;;  %vm239_vm1 = vcmask 64512  }
   0x4   :  { %v622_v4 = vld [vmem:[%s830_s2 + $0x18] sm:$0xff]  ;;  %v621_v5 = vld [vmem:[%s830_s2 + $0x10] sm:$0xff]  ;;  %v620_v6 = vld [vmem:[%s830_s2 + $0x8] sm:$0xff]  ;;  %vm191_vm2 = vcmask 523264   ;;  %vm388_vm3 = vcmask 130048   ;;  %s503_s27 = sshll.u32 %s837_s9, 4  ;;  %s504_s27 = int_to_ptr.hbm [resolvable:$true] %s503_s27 }
   0x5   :  { %v619_v7 = vld [vmem:[%s830_s2] sm:$0xff]  ;;  %v616_v9 = vld [vmem:[%s828_s0 + $0x8] sm:$0xff]  ;;  %v617_v10 = vld [vmem:[%s828_s0 + $0x10] sm:$0xff]  ;;  %s665_s28 = smov 128   ;;  %s666_s29 = smov 8  }
   0x6   :  { %139 = vmatpush.bf16.msra.mxu0 %v625_v1  ;;  %v615_v8 = vld [vmem:[%s828_s0] sm:$0xff]  ;;  %v618_v11 = vld [vmem:[%s828_s0 + $0x18] sm:$0xff]  ;;  %v769_v27 = vld [vmem:[%s829_s1 + $0x8] sm:$0xff] }
   0x7   :  { %v237_v12 = vld [vmem:[%s831_s3] sm:$0xf]  ;;  %v778_v28 = vld [vmem:[%s829_s1 + $0x10] sm:$0xff]  ;;  %v785_v29 = vld [vmem:[%s829_s1 + $0x18] sm:$0xff] }
   0x8   :  { %v298_v13 = vsel %vm252_vm0, %v237_v12, 0  ;;  %v764_v26 = vld [vmem:[%s829_s1] sm:$0xff] }
   0x9   :  { %307 = vmatpush.bf16.msra.mxu3 %v298_v13  ;;  %v238_v30 = vld [vmem:[%s832_s4] sm:$0xf] }
   0xa   :  { %140 = vmatpush.bf16.msra.mxu0 %v624_v2  ;;  %v254_v31 = vsel %vm252_vm0, %v238_v30, 0  ;;  %v627_v44 = vld [vmem:[%s834_s6] sm:$0xff] }
   0xb   :  { %263 = vmatpush.bf16.msra.mxu2 %v254_v31  ;;  %v636_v50 = vld [vmem:[%s833_s5] ss:$0 sm:$0xff] }
   0xe   :  { %141 = vmatpush.bf16.msra.mxu0 %v623_v3 }
  0x12   :  { %142 = vmatpush.bf16.msra.mxu0 %v622_v4 }
  0x16   :  { %143 = vmatpush.bf16.msra.mxu0 %v621_v5 }
  0x1a   :  { %144 = vmatpush.bf16.msra.mxu0 %v620_v6 }
  0x1e   :  { %145 = vmatpush.bf16.msra.mxu0 %v619_v7 }
  0x21   :  { %146 = vmatmul.bf16.vlgmr.msra.gmra.mxu0 %v615_v8 }
  0x31   :  { %151 = vmatmul.bf16.gmra.mxu0 %v616_v9 }
  0x41   :  { %156 = vmatmul.bf16.gmra.mxu0 %v617_v10 }
  0x51   :  { %161 = vmatmul.bf16.gmra.mxu0 %v618_v11 }
  0x9e   :  { %v147_v14 = vpop.f32.mrf.mxu0 }
  0xa6   :  { %v149_v15 = vpop.f32.mrf.mxu0 }
  0xa7   :  { %v167_v16 = vpack.c.bf16 %v149_v15, %v147_v14 }
  0xa9   :  { %587 = vmatmul.msk.bf16.vlgmr.msra.gmra.mxu3 %vm239_vm1, %v167_v16 }
  0xae   :  { %v152_v17 = vpop.f32.mrf.mxu0 }
  0xb6   :  { %v154_v18 = vpop.f32.mrf.mxu0 }
  0xb7   :  { %v168_v19 = vpack.c.bf16 %v154_v18, %v152_v17  ;;  %v628_v18 = vld [vmem:[%s835_s7] sm:$0xff] }
  0xb8   :  { %408 = vmatpush.bf16.msrb.mxu3 %v628_v18 }
  0xb9   :  { %588 = vmatmul.msk.bf16.gmra.mxu3 %vm239_vm1, %v168_v19 }
  0xbe   :  { %v157_v20 = vpop.f32.mrf.mxu0 }
  0xc6   :  { %v159_v21 = vpop.f32.mrf.mxu0 }
  0xc7   :  { %v169_v22 = vpack.c.bf16 %v159_v21, %v157_v20 }
  0xc9   :  { %589 = vmatmul.msk.bf16.gmra.mxu3 %vm239_vm1, %v169_v22 }
  0xce   :  { %v162_v23 = vpop.f32.mrf.mxu0 }
  0xd6   :  { %v164_v24 = vpop.f32.mrf.mxu0 }
  0xd7   :  { %v170_v25 = vpack.c.bf16 %v164_v24, %v162_v23 }
  0xd9   :  { %208 = vmatpush.bf16.msrb.mxu0 %v170_v25  ;;  %629 = vmatpush.bf16.msra.mxu1 %v170_v25 }
  0xda   :  { %590 = vmatmul.msk.bf16.gmra.mxu3 %vm239_vm1, %v170_v25 }
  0xdd   :  { %209 = vmatpush.bf16.msrb.mxu0 %v169_v22  ;;  %630 = vmatpush.bf16.msra.mxu1 %v169_v22 }
  0xe1   :  { %210 = vmatpush.bf16.msrb.mxu0 %v168_v19  ;;  %631 = vmatpush.bf16.msra.mxu1 %v168_v19 }
  0xe5   :  { %211 = vmatpush.bf16.msrb.mxu0 %v167_v16  ;;  %632 = vmatpush.bf16.msra.mxu1 %v167_v16 }
  0xe8   :  { %579 = vmatmul.msk.bf16.vlgmr.msrb.gmra.mxu0 %vm191_vm2, %v764_v26  ;;  %580 = vmatmul.msk.bf16.vlgmr.msra.gmra.mxu1 %vm191_vm2, %v769_v27 }
  0xe9   :  { %455 = vmatpush.bf16.msrb.mxu1 %v627_v44 }
  0xf8   :  { %581 = vmatmul.msk.bf16.gmra.mxu1 %vm191_vm2, %v778_v28 }
 0x108   :  { %582 = vmatmul.msk.bf16.gmra.mxu1 %vm191_vm2, %v785_v29 }
 0x12c   :  { %v309_v45 = vpop.f32.mrf.mxu3 }
 0x134   :  { %v311_v46 = vpop.f32.mrf.mxu3 }
 0x13c   :  { %v314_v48 = vpop.f32.mrf.mxu3 }
 0x144   :  { %v316_v56 = vpop.f32.mrf.mxu3 }
 0x14c   :  { %v319_v61 = vpop.f32.mrf.mxu3 }
 0x154   :  { %v321_v2 = vpop.f32.mrf.mxu3 }
 0x15d   :  { %v324_v9 = vpop.f32.mrf.mxu3 }
 0x165   :  { %v213_v32 = vpop.f32.mrf.mxu0  ;;  %v218_v33 = vpop.f32.mrf.mxu1 }
 0x166   :  { %v326_v12 = vpop.f32.mrf.mxu3 }
 0x16d   :  { %v215_v34 = vpop.f32.mrf.mxu0  ;;  %v220_v36 = vpop.f32.mrf.mxu1 }
 0x16e   :  { %v233_v35 = vpack.c.bf16 %v215_v34, %v213_v32  ;;  %v234_v38 = vpack.c.bf16 %v220_v36, %v218_v33  ;;  %v637_v33 = vld [vmem:[%s836_s8] ss:$0 sm:$0xff]  ;;  %s664_s8 = smov [#allocation2]  }
 0x16f   :  { %s501_s24 = sshll.u32 %s664_s8, 4  ;;  %s502_s24 = int_to_ptr.vmem [resolvable:$true] %s501_s24 }
 0x170   :  { %583 = vmatmul.msk.bf16.vlgmr.msra.gmra.mxu2 %vm239_vm1, %v233_v35 }
 0x175   :  { %v223_v37 = vpop.f32.mrf.mxu1 }
 0x17d   :  { %v225_v39 = vpop.f32.mrf.mxu1 }
 0x17e   :  { %v235_v40 = vpack.c.bf16 %v225_v39, %v223_v37 }
 0x180   :  { %584 = vmatmul.msk.bf16.gmra.mxu2 %vm239_vm1, %v234_v38 }
 0x185   :  { %v228_v41 = vpop.f32.mrf.mxu1 }
 0x18d   :  { %v230_v42 = vpop.f32.mrf.mxu1 }
 0x18e   :  { %v236_v43 = vpack.c.bf16 %v230_v42, %v228_v41 }
 0x190   :  { %585 = vmatmul.msk.bf16.gmra.mxu2 %vm239_vm1, %v235_v40 }
 0x1a0   :  { %586 = vmatmul.msk.bf16.gmra.mxu2 %vm239_vm1, %v236_v43 }
 0x1f3   :  { %v265_v47 = vpop.f32.mrf.mxu2 }
 0x1f4   :  { %v310_v49 = vadd.f32 %v309_v45, %v265_v47 }
 0x1f6   :  { %v333_v53 = vadd.f32 %v636_v50, %v310_v49 }
 0x1fb   :  { %v267_v51 = vpop.f32.mrf.mxu2 }
 0x1fc   :  { %v312_v52 = vadd.f32 %v311_v46, %v267_v51 }
 0x1fe   :  { %v334_v54 = vadd.f32 %v636_v50, %v312_v52 }
 0x200   :  { %v341_v55 = vpack.c.bf16 %v334_v54, %v333_v53 }
 0x202   :  { %607 = vmatmul.msk.bf16.vlgmr.msrb.gmra.mxu1 %vm388_vm3, %v341_v55 }
 0x203   :  { %v270_v57 = vpop.f32.mrf.mxu2 }
 0x204   :  { %v315_v58 = vadd.f32 %v314_v48, %v270_v57 }
 0x206   :  { %v335_v62 = vadd.f32 %v636_v50, %v315_v58 }
 0x20b   :  { %v272_v59 = vpop.f32.mrf.mxu2 }
 0x20c   :  { %v317_v60 = vadd.f32 %v316_v56, %v272_v59 }
 0x20e   :  { %v336_v63 = vadd.f32 %v636_v50, %v317_v60 }
 0x210   :  { %v342_v0 = vpack.c.bf16 %v336_v63, %v335_v62 }
 0x212   :  { %608 = vmatmul.msk.bf16.gmra.mxu1 %vm388_vm3, %v342_v0 }
 0x213   :  { %v275_v1 = vpop.f32.mrf.mxu2 }
 0x214   :  { %v320_v3 = vadd.f32 %v319_v61, %v275_v1 }
 0x216   :  { %v337_v6 = vadd.f32 %v636_v50, %v320_v3 }
 0x21b   :  { %v277_v4 = vpop.f32.mrf.mxu2 }
 0x21c   :  { %v322_v5 = vadd.f32 %v321_v2, %v277_v4 }
 0x21e   :  { %v338_v7 = vadd.f32 %v636_v50, %v322_v5 }
 0x220   :  { %v343_v8 = vpack.c.bf16 %v338_v7, %v337_v6 }
 0x222   :  { %609 = vmatmul.msk.bf16.gmra.mxu1 %vm388_vm3, %v343_v8 }
 0x223   :  { %v280_v10 = vpop.f32.mrf.mxu2 }
 0x224   :  { %v325_v11 = vadd.f32 %v324_v9, %v280_v10 }
 0x226   :  { %v339_v15 = vadd.f32 %v636_v50, %v325_v11 }
 0x22b   :  { %v282_v13 = vpop.f32.mrf.mxu2 }
 0x22c   :  { %v327_v14 = vadd.f32 %v326_v12, %v282_v13 }
 0x22e   :  { %v340_v16 = vadd.f32 %v636_v50, %v327_v14 }
 0x230   :  { %v344_v17 = vpack.c.bf16 %v340_v16, %v339_v15 }
 0x232   :  { %349 = vmatpush.bf16.msrb.mxu2 %v344_v17  ;;  %610 = vmatmul.msk.bf16.gmra.mxu1 %vm388_vm3, %v344_v17 }
 0x236   :  { %350 = vmatpush.bf16.msrb.mxu2 %v343_v8 }
 0x23a   :  { %351 = vmatpush.bf16.msrb.mxu2 %v342_v0 }
 0x23e   :  { %352 = vmatpush.bf16.msrb.mxu2 %v341_v55 }
 0x241   :  { %591 = vmatmul.msk.bf16.vlgmr.msrb.gmra.mxu2 %vm191_vm2, %v764_v26 }
 0x251   :  { %592 = vmatmul.msk.bf16.gmra.mxu2 %vm191_vm2, %v769_v27 }
 0x261   :  { %593 = vmatmul.msk.bf16.gmra.mxu2 %vm191_vm2, %v778_v28 }
 0x271   :  { %594 = vmatmul.msk.bf16.gmra.mxu2 %vm191_vm2, %v785_v29 }
 0x27f   :  { %v457_v31 = vpop.f32.mrf.mxu1 }
 0x287   :  { %v459_v32 = vpop.f32.mrf.mxu1 }
 0x28f   :  { %v462_v37 = vpop.f32.mrf.mxu1 }
 0x297   :  { %v464_v41 = vpop.f32.mrf.mxu1 }
 0x29f   :  { %v467_v47 = vpop.f32.mrf.mxu1 }
 0x2a7   :  { %v469_v52 = vpop.f32.mrf.mxu1 }
 0x2af   :  { %v472_v56 = vpop.f32.mrf.mxu1 }
 0x2b7   :  { %v474_v60 = vpop.f32.mrf.mxu1 }
 0x2c4   :  { %v354_v19 = vpop.f32.mrf.mxu2 }
 0x2cc   :  { %v356_v20 = vpop.f32.mrf.mxu2 }
 0x2cd   :  { %v374_v21 = vpack.c.bf16 %v356_v20, %v354_v19 }
 0x2cf   :  { %599 = vmatmul.msk.bf16.vlgmr.msrb.gmra.mxu3 %vm388_vm3, %v374_v21 }
 0x2d4   :  { %v359_v22 = vpop.f32.mrf.mxu2 }
 0x2dc   :  { %v361_v23 = vpop.f32.mrf.mxu2 }
 0x2dd   :  { %v375_v24 = vpack.c.bf16 %v361_v23, %v359_v22 }
 0x2df   :  { %600 = vmatmul.msk.bf16.gmra.mxu3 %vm388_vm3, %v375_v24 }
 0x2e4   :  { %v364_v25 = vpop.f32.mrf.mxu2 }
 0x2ec   :  { %v366_v26 = vpop.f32.mrf.mxu2 }
 0x2ed   :  { %v376_v27 = vpack.c.bf16 %v366_v26, %v364_v25 }
 0x2ef   :  { %601 = vmatmul.msk.bf16.gmra.mxu3 %vm388_vm3, %v376_v27 }
 0x2f4   :  { %v369_v28 = vpop.f32.mrf.mxu2 }
 0x2fc   :  { %v371_v29 = vpop.f32.mrf.mxu2 }
 0x2fd   :  { %v377_v30 = vpack.c.bf16 %v371_v29, %v369_v28 }
 0x2ff   :  { %602 = vmatmul.msk.bf16.gmra.mxu3 %vm388_vm3, %v377_v30 }
 0x352   :  { %v410_v34 = vpop.f32.mrf.mxu3 }
 0x353   :  { %v458_v35 = vadd.f32 %v457_v31, %v410_v34 }
 0x355   :  { %v481_v36 = vadd.f32 %v637_v33, %v458_v35 }
 0x357   :  { %489 = vst [vmem:[#allocation2] sm:$0xff] %v481_v36 }
 0x35a   :  { %v412_v38 = vpop.f32.mrf.mxu3 }
 0x35b   :  { %v460_v39 = vadd.f32 %v459_v32, %v412_v38 }
 0x35d   :  { %v482_v40 = vadd.f32 %v637_v33, %v460_v39 }
 0x35f   :  { %490 = vst [vmem:[#allocation2 + $0x8] sm:$0xff] %v482_v40 }
 0x362   :  { %v415_v42 = vpop.f32.mrf.mxu3 }
 0x363   :  { %v463_v43 = vadd.f32 %v462_v37, %v415_v42 }
 0x365   :  { %v483_v44 = vadd.f32 %v637_v33, %v463_v43 }
 0x367   :  { %491 = vst [vmem:[#allocation2 + $0x10] sm:$0xff] %v483_v44 }
 0x36a   :  { %v417_v45 = vpop.f32.mrf.mxu3 }
 0x36b   :  { %v465_v46 = vadd.f32 %v464_v41, %v417_v45 }
 0x36d   :  { %v484_v48 = vadd.f32 %v637_v33, %v465_v46 }
 0x36f   :  { %492 = vst [vmem:[#allocation2 + $0x18] sm:$0xff] %v484_v48 }
 0x372   :  { %v420_v49 = vpop.f32.mrf.mxu3 }
 0x373   :  { %v468_v50 = vadd.f32 %v467_v47, %v420_v49 }
 0x375   :  { %v485_v51 = vadd.f32 %v637_v33, %v468_v50 }
 0x377   :  { %493 = vst [vmem:[#allocation2 + $0x20] sm:$0xff] %v485_v51 }
 0x37a   :  { %v422_v53 = vpop.f32.mrf.mxu3 }
 0x37b   :  { %v470_v54 = vadd.f32 %v469_v52, %v422_v53 }
 0x37d   :  { %v486_v55 = vadd.f32 %v637_v33, %v470_v54 }
 0x37f   :  { %494 = vst [vmem:[#allocation2 + $0x28] sm:$0xff] %v486_v55 }
 0x382   :  { %v425_v57 = vpop.f32.mrf.mxu3 }
 0x383   :  { %v473_v58 = vadd.f32 %v472_v56, %v425_v57 }
 0x385   :  { %v487_v59 = vadd.f32 %v637_v33, %v473_v58 }
 0x387   :  { %495 = vst [vmem:[#allocation2 + $0x30] sm:$0xff] %v487_v59 }
 0x38a   :  { %v427_v61 = vpop.f32.mrf.mxu3 }
 0x38b   :  { %v475_v62 = vadd.f32 %v474_v60, %v427_v61 }
 0x38d   :  { %v488_v63 = vadd.f32 %v637_v33, %v475_v62 }
 0x38f   :  { %496 = vst [vmem:[#allocation2 + $0x38] sm:$0xff] %v488_v63 }
 0x390   :  { %509 = dma.vmem_to_hbm [thread:$0]  %s502_s24, 1024, %s504_s27, [#allocation3], %s665_s28, %s665_s28, %s666_s29  }
 0x391   :  { %662 = dma.done.wait [#allocation3], 1024  }
 0x392   :  { %663 = vsyncadd [#allocation3], 4294966272 }
 0x393   :  { %514 = vsyncpa [#allocation3], 1 }

</bundles_post_ra>
